<compile_context>
chip_gen: v7x
topology: tpu7x:2x2x1
jax: 0.10.0
libtpu: 0.0.40
codegen_flags: <defaults>
</compile_context>

<pallas_src>
import jax
import jax.numpy as jnp
from jax.experimental import pallas as pl
from jax.experimental.pallas import tpu as pltpu


def _round_up(x, m):
    return (x + m - 1) // m * m


# ----------------------------------------------------------------------------
# Kernel: H-tiled fused MLP for a single (row-0) query.
#   grid = (H_p // tH,), axis semantics "arbitrary" (reduction over H tiles).
# ----------------------------------------------------------------------------
def _mlp_row0_kernel(x_ref, s_ref, w1a_ref, w1b_ref, b1_ref, w2t_ref, b2_ref,
                     out_ref, acc_ref):
    # x:   [1, De_p]   row 0 of elmo_emb (zero-padded), resident across grid
    # s:   [1, Ds_p]   sentence embedding row (zero-padded), resident
    # w1a: [De_p, tH]  W1[:, :De].T tile
    # w1b: [Ds_p, tH]  W1[:, De:].T tile
    # b1:  [1, tH]     b1 tile (f32, padded lanes exactly zero)
    # w2t: [tH, O_p]   W2.T tile
    # b2:  [1, O_p]    (f32)
    # acc: [1, O_p]    f32 VMEM scratch accumulator
    k = pl.program_id(0)

    @pl.when(k == 0)
    def _():
        acc_ref[...] = jnp.zeros_like(acc_ref)

    # First layer for this H-tile: the original concat is split into two dots.
    h = jnp.dot(x_ref[...], w1a_ref[...], preferred_element_type=jnp.float32)
    h += jnp.dot(s_ref[...], w1b_ref[...], preferred_element_type=jnp.float32)
    h = jnp.maximum(h + b1_ref[...], 0.0)            # bias + ReLU in f32

    # Second-layer partial sum.  Cast h to the weight compute dtype so the
    # bf16 MXU path is actually engaged; accumulation stays f32.
    w2 = w2t_ref[...]
    acc_ref[...] += jnp.dot(h.astype(w2.dtype), w2,
                            preferred_element_type=jnp.float32)

    @pl.when(k == pl.num_programs(0) - 1)
    def _():
        out_ref[...] = (acc_ref[...] + b2_ref[...]).astype(out_ref.dtype)


# ----------------------------------------------------------------------------
# Parameter init (mimics nn.Linear default uniform(+-1/sqrt(fan_in))).
# ----------------------------------------------------------------------------
def init_params(key, emb_dim, hidden_size, out_dim):
    k1, k2, k3, k4 = jax.random.split(key, 4)
    lim1 = 1.0 / (emb_dim ** 0.5)
    lim2 = 1.0 / (hidden_size ** 0.5)
    return {
        "w1": jax.random.uniform(k1, (hidden_size, emb_dim), jnp.float32, -lim1, lim1),
        "b1": jax.random.uniform(k2, (hidden_size,), jnp.float32, -lim1, lim1),
        "w2": jax.random.uniform(k3, (out_dim, hidden_size), jnp.float32, -lim2, lim2),
        "b2": jax.random.uniform(k4, (out_dim,), jnp.float32, -lim2, lim2),
    }


def _choose_h_tile(De_p, Ds_p, H_p, O_p, cbytes, budget_bytes):
    """Largest 128-multiple H tile whose double-buffered weight tiles fit the
    (generation-conservative) VMEM budget and that divides H_p."""
    def dbuf_bytes(tH):
        # double-buffered per-step tiles: w1a, w1b, w2t (compute dtype) + b1 (f32)
        return 2 * (((De_p + Ds_p) * tH + tH * O_p) * cbytes + tH * 4)

    if dbuf_bytes(H_p) <= budget_bytes:
        return H_p
    tH = H_p
    while tH > 128 and (dbuf_bytes(tH) > budget_bytes or H_p % tH != 0):
        tH -= 128
    return max(tH, 128)


# ----------------------------------------------------------------------------
# One-time (per model) weight preprocessing: transpose, split the concat,
# pad to lane/MXU-aligned (multiple-of-128) shapes, pick the H tile.
# ----------------------------------------------------------------------------
def prepare_params(params, elmo_dim, sent_dim, compute_dtype=jnp.float32,
                   h_tile=None, vmem_budget_bytes=12 << 20):
    w1, b1, w2, b2 = params["w1"], params["b1"], params["w2"], params["b2"]
    H, emb_dim = w1.shape
    O = w2.shape[0]
    De, Ds = elmo_dim, sent_dim
    assert emb_dim == De + Ds

    De_p = _round_up(De, 128)
    Ds_p = _round_up(Ds, 128)
    H_p = _round_up(H, 128)
    O_p = _round_up(O, 128)

    cbytes = jnp.dtype(compute_dtype).itemsize
    if h_tile is None:
        tH = _choose_h_tile(De_p, Ds_p, H_p, O_p, cbytes, vmem_budget_bytes)
    else:
        tH = h_tile
        assert tH % 128 == 0 and H_p % tH == 0

    cd = compute_dtype
    w1a_t = jnp.transpose(w1[:, :De])          # [De, H]  (elmo part of concat)
    w1b_t = jnp.transpose(w1[:, De:])          # [Ds, H]  (sentence part)
    w2_t = jnp.transpose(w2)                   # [H, O]

    # NOTE: padded regions must stay exactly zero (relu(0)=0 and zero W2 rows
    # make the padding contribute nothing to the output).
    w1a_p = jnp.zeros((De_p, H_p), cd).at[:De, :H].set(w1a_t.astype(cd))
    w1b_p = jnp.zeros((Ds_p, H_p), cd).at[:Ds, :H].set(w1b_t.astype(cd))
    w2t_p = jnp.zeros((H_p, O_p), cd).at[:H, :O].set(w2_t.astype(cd))
    b1_p = jnp.zeros((1, H_p), jnp.float32).at[0, :H].set(b1)
    b2_p = jnp.zeros((1, O_p), jnp.float32).at[0, :O].set(b2)

    return {
        "w1a_p": w1a_p, "w1b_p": w1b_p, "b1_p": b1_p,
        "w2t_p": w2t_p, "b2_p": b2_p,
        "dims": (De, Ds, H, O, De_p, Ds_p, H_p, O_p, tH),
        "compute_dtype": cd,
    }


# ----------------------------------------------------------------------------
# Build the jitted forward for a prepared parameter set.
# ----------------------------------------------------------------------------
def make_forward(prep):
    De, Ds, H, O, De_p, Ds_p, H_p, O_p, tH = prep["dims"]
    cd = prep["compute_dtype"]
    cbytes = jnp.dtype(cd).itemsize
    n_steps = H_p // tH

    flops = 2 * (De_p * H_p + Ds_p * H_p + H_p * O_p)
    bytes_accessed = ((De_p * H_p + Ds_p * H_p + H_p * O_p) * cbytes  # weights
                      + (H_p + O_p) * 4                               # biases
                      + (De_p + Ds_p) * cbytes + O_p * 4)             # act in/out
    cost = pl.CostEstimate(flops=flops, transcendentals=0,
                           bytes_accessed=bytes_accessed)

    # VMEM: double-buffered weight tiles + small residents, with headroom.
    dbuf = 2 * (((De_p + Ds_p) * tH + tH * O_p) * cbytes + tH * 4)
    resident = (De_p + Ds_p) * cbytes + 3 * O_p * 4
    vmem_limit = int(min(max(dbuf + resident + (4 << 20), 16 << 20), 48 << 20))

    grid_spec = pltpu.PrefetchScalarGridSpec(
        num_scalar_prefetch=0,
        grid=(n_steps,),
        in_specs=[
            pl.BlockSpec((1, De_p), lambda k: (0, 0)),    # x row (resident)
            pl.BlockSpec((1, Ds_p), lambda k: (0, 0)),    # sent row (resident)
            pl.BlockSpec((De_p, tH), lambda k: (0, k)),   # W1a tile (streams)
            pl.BlockSpec((Ds_p, tH), lambda k: (0, k)),   # W1b tile (streams)
            pl.BlockSpec((1, tH), lambda k: (0, k)),      # b1 tile
            pl.BlockSpec((tH, O_p), lambda k: (k, 0)),    # W2 tile (streams)
            pl.BlockSpec((1, O_p), lambda k: (0, 0)),     # b2 (resident)
        ],
        out_specs=pl.BlockSpec((1, O_p), lambda k: (0, 0)),
        scratch_shapes=[pltpu.VMEM((1, O_p), jnp.float32)],
    )

    kernel = pl.pallas_call(
        _mlp_row0_kernel,
        out_shape=jax.ShapeDtypeStruct((1, O_p), jnp.float32),
        grid_spec=grid_spec,
        compiler_params=pltpu.CompilerParams(
            dimension_semantics=("arbitrary",),
            vmem_limit_bytes=vmem_limit),
        cost_estimate=cost,
    )

    @jax.jit
    def forward(elmo_emb, sent_emb, w1a_p, w1b_p, b1_p, w2t_p, b2_p):
        # y_pred[0] depends only on row 0 of the embeddings -> single row.
        # These tiny pads fuse with the pallas_call under the same jit.
        x0 = jnp.zeros((1, De_p), cd).at[:, :De].set(elmo_emb[0:1, :].astype(cd))
        s = jnp.zeros((1, Ds_p), cd).at[:, :Ds].set(
            sent_emb.reshape(1, Ds).astype(cd))
        y = kernel(x0, s, w1a_p, w1b_p, b1_p, w2t_p, b2_p)
        return y[0, :O]

    def run(elmo_emb, sent_emb):
        return forward(elmo_emb, sent_emb, prep["w1a_p"], prep["w1b_p"],
                       prep["b1_p"], prep["w2t_p"], prep["b2_p"])

    return run


if __name__ == "__main__":
    # Small, forward-consistent shapes (De lane-aligned like production's 1024).
    N = 8            # number of rows ELMo produces (elmo_emb.shape[0])
    ELMO_DIM = 128   # synthetic stand-in for ELMo's 1024-dim output
    SENT_DIM = 64    # sentence embedding dim
    HIDDEN = 256
    OUT_DIM = 8
    EMB_DIM = ELMO_DIM + SENT_DIM

    key = jax.random.PRNGKey(0)
    k_elmo, k_sent, k_params = jax.random.split(key, 3)

    # Synthetic ELMo output (stands in for self.elmo(batch_to_ids(sentence))).
    elmo_emb = jax.random.normal(k_elmo, (N, ELMO_DIM), jnp.float32)
    sent_emb = jax.random.normal(k_sent, (SENT_DIM,), jnp.float32)
    params = init_params(k_params, EMB_DIM, HIDDEN, OUT_DIM)

    # Reference: full original semantics (concat + repeat) in plain JAX, row 0.
    emb = jnp.concatenate(
        [elmo_emb, jnp.tile(sent_emb.reshape(1, -1), (N, 1))], axis=1)
    h_ref = jnp.maximum(emb @ params["w1"].T + params["b1"], 0.0)
    y_ref = (h_ref @ params["w2"].T + params["b2"])[0]

    # f32 path; h_tile=128 forces a 2-step H grid to exercise the accumulator.
    prep_f32 = prepare_params(params, ELMO_DIM, SENT_DIM,
                              compute_dtype=jnp.float32, h_tile=128)
    y_f32 = jax.block_until_ready(make_forward(prep_f32)(elmo_emb, sent_emb))
    assert y_f32.shape == (OUT_DIM,)
    assert jnp.allclose(y_f32, y_ref, atol=1e-5, rtol=1e-5)

    # bf16 weight path (f32 accumulation): halves weight DMA at real ELMo dims
    # and uses the bf16 MXU path on v6e/v7x.  Looser tolerance expected.
    prep_bf16 = prepare_params(params, ELMO_DIM, SENT_DIM,
                               compute_dtype=jnp.bfloat16)
    y_bf16 = jax.block_until_ready(make_forward(prep_bf16)(elmo_emb, sent_emb))
    assert y_bf16.shape == (OUT_DIM,)
    assert jnp.allclose(y_bf16, y_ref, atol=5e-2, rtol=5e-2)

    print("KERNEL_OK")
</pallas_src>

<mosaic_0001>
module attributes {stable_mosaic.version = 11 : i64} {
  func.func @_mlp_row0_kernel(%arg0: i32, %arg1: memref<1x128xf32, #tpu.memory_space<vmem>>, %arg2: memref<1x128xf32, #tpu.memory_space<vmem>>, %arg3: memref<128x128xf32, #tpu.memory_space<vmem>>, %arg4: memref<128x128xf32, #tpu.memory_space<vmem>>, %arg5: memref<1x128xf32, #tpu.memory_space<vmem>>, %arg6: memref<128x128xf32, #tpu.memory_space<vmem>>, %arg7: memref<1x128xf32, #tpu.memory_space<vmem>>, %arg8: memref<1x128xf32, #tpu.memory_space<vmem>>, %arg9: memref<1x128xf32, #tpu.memory_space<vmem>>) attributes {dimension_semantics = [#tpu.dimension_semantics<arbitrary>], iteration_bounds = array<i64: 2>, scalar_prefetch = 0 : i64, scratch_operands = 1 : i64, tpu.core_type = #tpu.core_type<tc>, window_params = [{pipeline_mode = #tpu.pipeline_mode<synchronous>, transform_indices = @transform_0, window_bounds = array<i64: 1, 128>}, {pipeline_mode = #tpu.pipeline_mode<synchronous>, transform_indices = @transform_1, window_bounds = array<i64: 1, 128>}, {transform_indices = @transform_2, window_bounds = array<i64: 128, 128>}, {transform_indices = @transform_3, window_bounds = array<i64: 128, 128>}, {transform_indices = @transform_4, window_bounds = array<i64: 1, 128>}, {transform_indices = @transform_5, window_bounds = array<i64: 128, 128>}, {pipeline_mode = #tpu.pipeline_mode<synchronous>, transform_indices = @transform_6, window_bounds = array<i64: 1, 128>}, {pipeline_mode = #tpu.pipeline_mode<synchronous>, transform_indices = @transform_7, window_bounds = array<i64: 1, 128>}]} {
    %c0_i32 = arith.constant 0 : i32
    %0 = arith.cmpi eq, %arg0, %c0_i32 : i32
    %1 = arith.extui %0 : i1 to i32
    %c0_i32_0 = arith.constant 0 : i32
    %2 = arith.cmpi ne, %1, %c0_i32_0 : i32
    scf.if %2 {
      %cst_20 = arith.constant 0.000000e+00 : f32
      %22 = vector.broadcast %cst_20 : f32 to vector<1x128xf32>
      %c0_21 = arith.constant 0 : index
      %c0_22 = arith.constant 0 : index
      %23 = vector.load %arg9[%c0_21, %c0_22] : memref<1x128xf32, #tpu.memory_space<vmem>>, vector<1x128xf32>
      tpu.vector_store %arg9[%c0_21, %c0_22], %22 {strides = array<i32>} : memref<1x128xf32, #tpu.memory_space<vmem>>, vector<1x128xf32>,
    } else {
    }
    %c0 = arith.constant 0 : index
    %c0_1 = arith.constant 0 : index
    %3 = vector.load %arg1[%c0, %c0_1] : memref<1x128xf32, #tpu.memory_space<vmem>>, vector<1x128xf32>
    %c0_2 = arith.constant 0 : index
    %c0_3 = arith.constant 0 : index
    %4 = vector.load %arg3[%c0_2, %c0_3] : memref<128x128xf32, #tpu.memory_space<vmem>>, vector<128x128xf32>
    %cst = arith.constant dense<0.000000e+00> : vector<1x128xf32>
    %5 = tpu.matmul %3, %4, %cst {dimension_numbers = #tpu.dot_dimension_numbers<[1], [0], [0], [1], [0, 0, 1, 1], [], []>} : vector<1x128xf32>, vector<128x128xf32>, vector<1x128xf32> -> vector<1x128xf32>
    %c0_4 = arith.constant 0 : index
    %c0_5 = arith.constant 0 : index
    %6 = vector.load %arg2[%c0_4, %c0_5] : memref<1x128xf32, #tpu.memory_space<vmem>>, vector<1x128xf32>
    %c0_6 = arith.constant 0 : index
    %c0_7 = arith.constant 0 : index
    %7 = vector.load %arg4[%c0_6, %c0_7] : memref<128x128xf32, #tpu.memory_space<vmem>>, vector<128x128xf32>
    %cst_8 = arith.constant dense<0.000000e+00> : vector<1x128xf32>
    %8 = tpu.matmul %6, %7, %cst_8 {dimension_numbers = #tpu.dot_dimension_numbers<[1], [0], [0], [1], [0, 0, 1, 1], [], []>} : vector<1x128xf32>, vector<128x128xf32>, vector<1x128xf32> -> vector<1x128xf32>
    %9 = arith.addf %5, %8 : vector<1x128xf32>
    %c0_9 = arith.constant 0 : index
    %c0_10 = arith.constant 0 : index
    %10 = vector.load %arg5[%c0_9, %c0_10] : memref<1x128xf32, #tpu.memory_space<vmem>>, vector<1x128xf32>
    %11 = arith.addf %9, %10 : vector<1x128xf32>
    %cst_11 = arith.constant 0.000000e+00 : f32
    %12 = vector.broadcast %cst_11 : f32 to vector<1x128xf32>
    %13 = arith.maximumf %11, %12 : vector<1x128xf32>
    %c0_12 = arith.constant 0 : index
    %c0_13 = arith.constant 0 : index
    %14 = vector.load %arg6[%c0_12, %c0_13] : memref<128x128xf32, #tpu.memory_space<vmem>>, vector<128x128xf32>
    %c0_14 = arith.constant 0 : index
    %c0_15 = arith.constant 0 : index
    %15 = vector.load %arg9[%c0_14, %c0_15] : memref<1x128xf32, #tpu.memory_space<vmem>>, vector<1x128xf32>
    %cst_16 = arith.constant dense<0.000000e+00> : vector<1x128xf32>
    %16 = tpu.matmul %13, %14, %cst_16 {dimension_numbers = #tpu.dot_dimension_numbers<[1], [0], [0], [1], [0, 0, 1, 1], [], []>} : vector<1x128xf32>, vector<128x128xf32>, vector<1x128xf32> -> vector<1x128xf32>
    %17 = arith.addf %15, %16 : vector<1x128xf32>
    %c0_17 = arith.constant 0 : index
    %c0_18 = arith.constant 0 : index
    %18 = vector.load %arg9[%c0_17, %c0_18] : memref<1x128xf32, #tpu.memory_space<vmem>>, vector<1x128xf32>
    tpu.vector_store %arg9[%c0_17, %c0_18], %17 {strides = array<i32>} : memref<1x128xf32, #tpu.memory_space<vmem>>, vector<1x128xf32>,
    %c1_i32 = arith.constant 1 : i32
    %19 = arith.cmpi eq, %arg0, %c1_i32 : i32
    %20 = arith.extui %19 : i1 to i32
    %c0_i32_19 = arith.constant 0 : i32
    %21 = arith.cmpi ne, %20, %c0_i32_19 : i32
    scf.if %21 {
      %c0_20 = arith.constant 0 : index
      %c0_21 = arith.constant 0 : index
      %22 = vector.load %arg9[%c0_20, %c0_21] : memref<1x128xf32, #tpu.memory_space<vmem>>, vector<1x128xf32>
      %c0_22 = arith.constant 0 : index
      %c0_23 = arith.constant 0 : index
      %23 = vector.load %arg7[%c0_22, %c0_23] : memref<1x128xf32, #tpu.memory_space<vmem>>, vector<1x128xf32>
      %24 = arith.addf %22, %23 : vector<1x128xf32>
      %c0_24 = arith.constant 0 : index
      %c0_25 = arith.constant 0 : index
      %25 = vector.load %arg8[%c0_24, %c0_25] : memref<1x128xf32, #tpu.memory_space<vmem>>, vector<1x128xf32>
      tpu.vector_store %arg8[%c0_24, %c0_25], %24 {strides = array<i32>} : memref<1x128xf32, #tpu.memory_space<vmem>>, vector<1x128xf32>,
    } else {
    }
    return
  }
  func.func @transform_0(%arg0: i32) -> (i32, i32) {
    %c0_i32 = arith.constant 0 : i32
    %c0_i32_0 = arith.constant 0 : i32
    %c0_i32_1 = arith.constant 0 : i32
    return %c0_i32, %c0_i32_0 : i32, i32
  }
  func.func @transform_1(%arg0: i32) -> (i32, i32) {
    %c0_i32 = arith.constant 0 : i32
    %c0_i32_0 = arith.constant 0 : i32
    %c0_i32_1 = arith.constant 0 : i32
    return %c0_i32, %c0_i32_0 : i32, i32
  }
  func.func @transform_2(%arg0: i32) -> (i32, i32) {
    %c0_i32 = arith.constant 0 : i32
    %c0_i32_0 = arith.constant 0 : i32
    return %c0_i32, %arg0 : i32, i32
  }
  func.func @transform_3(%arg0: i32) -> (i32, i32) {
    %c0_i32 = arith.constant 0 : i32
    %c0_i32_0 = arith.constant 0 : i32
    return %c0_i32, %arg0 : i32, i32
  }
  func.func @transform_4(%arg0: i32) -> (i32, i32) {
    %c0_i32 = arith.constant 0 : i32
    %c0_i32_0 = arith.constant 0 : i32
    return %c0_i32, %arg0 : i32, i32
  }
  func.func @transform_5(%arg0: i32) -> (i32, i32) {
    %c0_i32 = arith.constant 0 : i32
    %c0_i32_0 = arith.constant 0 : i32
    return %arg0, %c0_i32 : i32, i32
  }
  func.func @transform_6(%arg0: i32) -> (i32, i32) {
    %c0_i32 = arith.constant 0 : i32
    %c0_i32_0 = arith.constant 0 : i32
    %c0_i32_1 = arith.constant 0 : i32
    return %c0_i32, %c0_i32_0 : i32, i32
  }
  func.func @transform_7(%arg0: i32) -> (i32, i32) {
    %c0_i32 = arith.constant 0 : i32
    %c0_i32_0 = arith.constant 0 : i32
    %c0_i32_1 = arith.constant 0 : i32
    return %c0_i32, %c0_i32_0 : i32, i32
  }
}

</mosaic_0001>

<bundles_post_ra>
// kernel: forward.1
= control target key start
LH: loop header
LB: loop body
LE: loop exit
PB: predicated region body
PF: predicated region fallthrough
CT: control target
= control target key end

     0   :  { %s1538_s0 = inlined_call_operand.vmem [shape: f32[1,128], index: 0, kind: input, shape index: {}]   ;;  %s1539_s1 = inlined_call_operand.vmem [shape: f32[1,128], index: 1, kind: input, shape index: {}]   ;;  %s1540_s2 = inlined_call_operand.hbm [shape: f32[128,256], index: 2, kind: input, shape index: {}]   ;;  %s1541_s3 = inlined_call_operand.hbm [shape: f32[128,256], index: 3, kind: input, shape index: {}]   ;;  %s1542_s4 = inlined_call_operand.vmem [shape: f32[1,256], index: 4, kind: input, shape index: {}]   ;;  %s1543_s5 = inlined_call_operand.hbm [shape: f32[256,128], index: 5, kind: input, shape index: {}]   ;;  %s1544_s6 = inlined_call_operand.vmem [shape: f32[1,128], index: 6, kind: input, shape index: {}]   ;;  %s1545_s7 = inlined_call_operand.vmem [shape: f32[1,128], index: 7, kind: output, shape index: {}]  }
   0x1   :  { %1553 = sst [smem:[#allocation10_spill]] %s1540_s2 }
   0x2   :  { %1554 = sst [smem:[#allocation11_spill]] %s1541_s3 }
   0x3   :  { %12 = vsyncpa [#allocation4], 0 }
   0x4   :  { %14 = vsyncpa [#allocation4 + $0x1], 0 }
   0x5   :  { %15 = vsyncpa [#allocation6], 0 }
   0x6   :  { %17 = vsyncpa [#allocation6 + $0x1], 0  ;;  %s1227_s24 = smov 0   ;;  %s1229_s25 = smov 0  }
   0x7   :  { %s1231_s26 = smov 0   ;;  %s1233_s27 = smov 0  }
   0x8 LB: > { %s1246_s28 = sadd.s32 4294967295, %s1175_s27   ;;  %s1249_s29 = sadd.s32 1, %s1175_s27   ;;  %s1175_s27 = sphi %s1233_s27, %s1571_s27   ;;  %s1171_s26 = sphi %s1231_s26, %s1570_s26   ;;  %s1167_s25 = sphi %s1229_s25, %s1569_s25   ;;  %s1163_s24 = sphi %s1227_s24, %s1568_s24  }
   0x9   : > { %s69_s30 = ssub.s32 %s1175_s27, %s1249_s29  ;;  %s72_s8 = sadd.s32 1, %s1171_s26 }
   0xa   : > { %p70_p0 = scmp.eq.s32.totalorder %s69_s30, 0  ;;  %p79_p1 = scmp.ne.s32.totalorder %s1171_s26, %s1167_s25 }
   0xb   : > { %p80_p2 = scmp.eq.s32.totalorder %s1175_s27, 0  ;;  %p85_p3 = scmp.ne.s32.totalorder %s1167_s25, %s1163_s24 }
   0xc   : > { %s1259_s9 = scalar_select %p70_p0, %s1171_s26, %s72_s8  }
   0xd   : > { %p81_p4 = por %p80_p2, %p79_p1  ;;  %p86_p5 = scmp.eq.s32.totalorder %s1246_s28, 0 }
   0xe   : > { %p1007_p6 = scmp.lt.s32.totalorder %s1175_s27, 2  ;;  %s1547_s11 = sand.u32 1, %s1171_s26  }
   0xf   : > { %p1263_p7 = por %p86_p5, %p85_p3  ;;  %s1270_s12 = sshll.u32 %s1547_s11, 7 }
  0x10   : > { %s748_s13 = sshll.u32 %s1175_s27, 7  ;;  %p1273_p8 = pnand %p1007_p6, %p81_p4 }
  0x11   : > { %s1555_s10 = scalar_select %p1263_p7, 1, 0 }
  0x12   : > { %s258_s15 = sand.u32 1, %s1175_s27   ;;  %s1557_s3 = sld [smem:[#allocation11_spill]] }
  0x13   : > { %s262_s19 = scalar_lea.vmem [#allocation5], %s1270_s12  ;;  %s1289_s21 = scalar_lea.sflag [#allocation6], %s258_s15 }
  0x14   : > { %s268_s20 = sshll.u32 %s262_s19, 4  ;;  %p1295_p11 = pneg %p1273_p8  ;;  %s1286_s20 = int_to_ptr.vmem [resolvable:$true] %s268_s20 }
  0x18   : > { %s1283_s18 = scalar_lea.hbm %s1557_s3, %s748_s13  ;;  %s1052_s8 = scalar_lea.hbm %s1557_s3, 4096 }
  0x19   : > { %s1047_s22 = scalar_lea.hbm %s1283_s18, 2048  ;;  %p1053_p0 = scmp.lt.u32.totalorder %s1283_s18, %s1557_s3 }
  0x1a   : > { %p1048_p10 = scmp.ne.s32.totalorder %s1283_s18, %s1047_s22  ;;  %p1054_p1 = scmp.lt.u32.totalorder %s1052_s8, %s1047_s22 }
  0x1b   : > { %p1056_p3 = scmp.lt.u32.totalorder %s1047_s22, %s1283_s18 }
  0x1c   : > { %p1050_p12 = pnand %p1295_p11, %p1048_p10  ;;  %p1055_p2 = por %p1054_p1, %p1053_p0 }
  0x1e   : > { %p1051_p13 = pneg %p1050_p12  ;;  %p1057_p4 = por %p1056_p3, %p1055_p2 }
  0x20   : > { %p1058_p5 = pnand %p1057_p4, %p1051_p13 }
  0x22   : > { %1061 = shalt.err (!%p1058_p5)
}
  0x23   : > { %s1062_s15 = scalar_lea.vmem %s1286_s20, 2048  ;;  %s1177_s19 = smov [#allocation5]  }
  0x24   : > { %p1063_p6 = scmp.ne.s32.totalorder %s1286_s20, %s1062_s15  ;;  %s1067_s24 = sshll.u32 %s1177_s19, 4  ;;  %s1068_s24 = int_to_ptr.vmem [resolvable:$false] %s1067_s24 }
  0x25   : > { %s1069_s30 = scalar_lea.vmem %s1068_s24, 4096  ;;  %p1070_p9 = scmp.lt.s32.totalorder %s1286_s20, %s1068_s24 }
  0x26   : > { %p1065_p10 = pnand %p1063_p6, %p1295_p11  ;;  %p1071_p7 = scmp.lt.s32.totalorder %s1069_s30, %s1062_s15 }
  0x28   : > { %p1066_p12 = pneg %p1065_p10  ;;  %p1072_p0 = por %p1071_p7, %p1070_p9 }
  0x2a   : > { %p1073_p1 = pnand %p1072_p0, %p1066_p12 }
  0x2c   : > { %1076 = shalt.err (!%p1073_p1)
}
  0x2d   : > { %s1548_s22 = smov 256   ;;  %s1549_s8 = smov 128  }
  0x2e   : > { %s1551_s16 = smov 8   ;;  %p303_p7 = scmp.lt.s32.totalorder %s1175_s27, 3 }
  0x2f   : > { %1003 = dma.hbm_to_vmem [thread:$0]  (!%p1273_p8), %s1283_s18, 2048, %s1286_s20, %s1289_s21, %s1548_s22, %s1549_s8, %s1551_s16  }
  0x30   : > { %s1559_s2 = sld [smem:[#allocation10_spill]]  ;;  %p1560_p9 = scmp.ge.s32.totalorder %s1175_s27, 1 }
  0x31   : > { %s242_s30 = scalar_lea.vmem [#allocation3], %s1270_s12  ;;  %s1562_s18 = sand.u32 1, %s1171_s26  }
  0x32   : > { %p1332_p13 = pnand %p1560_p9, %p303_p7  ;;  %s248_s11 = sshll.u32 %s242_s30, 4  ;;  %s1337_s11 = int_to_ptr.vmem [resolvable:$true] %s248_s11 }
  0x33   : > { %s1341_s20 = scalar_lea.sflag [#allocation4], %s1562_s18 }
  0x34   : > { %s1561_s24 = scalar_select %p1332_p13, 1, 0 }
  0x36   : > { %s1328_s19 = scalar_lea.hbm %s1559_s2, %s748_s13  ;;  %s1082_s15 = scalar_lea.hbm %s1559_s2, 4096 }
  0x37   : > { %s1077_s22 = scalar_lea.hbm %s1328_s19, 2048  ;;  %p1083_p5 = scmp.lt.u32.totalorder %s1328_s19, %s1559_s2 }
  0x38   : > { %p1078_p2 = scmp.ne.s32.totalorder %s1328_s19, %s1077_s22  ;;  %p1084_p6 = scmp.lt.u32.totalorder %s1082_s15, %s1077_s22 }
  0x39   : > { %p1086_p12 = scmp.lt.u32.totalorder %s1077_s22, %s1328_s19 }
  0x3a   : > { %p1080_p3 = pnand %p1078_p2, %p1295_p11  ;;  %p1085_p10 = por %p1084_p6, %p1083_p5 }
  0x3c   : > { %p1081_p4 = pneg %p1080_p3  ;;  %p1087_p0 = por %p1086_p12, %p1085_p10 }
  0x3e   : > { %p1088_p1 = pnand %p1087_p0, %p1081_p4 }
  0x40   : > { %1091 = shalt.err (!%p1088_p1)
}
  0x41   : > { %s1092_s30 = scalar_lea.vmem %s1337_s11, 2048  ;;  %s1181_s18 = smov [#allocation3]  }
  0x42   : > { %p1093_p7 = scmp.ne.s32.totalorder %s1337_s11, %s1092_s30  ;;  %s1097_s13 = sshll.u32 %s1181_s18, 4  ;;  %s1098_s13 = int_to_ptr.vmem [resolvable:$false] %s1097_s13 }
  0x43   : > { %s1099_s8 = scalar_lea.vmem %s1098_s13, 4096  ;;  %p1100_p3 = scmp.lt.s32.totalorder %s1337_s11, %s1098_s13 }
  0x44   : > { %p1095_p9 = pnand %p1093_p7, %p1295_p11  ;;  %p1101_p13 = scmp.lt.s32.totalorder %s1099_s8, %s1092_s30 }
  0x46   : > { %p1096_p2 = pneg %p1095_p9  ;;  %p1102_p5 = por %p1101_p13, %p1100_p3 }
  0x48   : > { %p1103_p6 = pnand %p1102_p5, %p1096_p2 }
  0x4a   : > { %1106 = shalt.err (!%p1103_p6)
}
  0x4b   : > { %s1563_s22 = smov 8   ;;  %s1564_s16 = smov 128  }
  0x4c   : > { %s1565_s17 = smov 256   ;;  %s762_s15 = sshll.u32 %s1175_s27, 11 }
  0x4d   : > { %1000 = dma.hbm_to_vmem [thread:$0]  (!%p1273_p8), %s1328_s19, 2048, %s1337_s11, %s1341_s20, %s1565_s17, %s1564_s16, %s1563_s22  }
  0x4e   : > { %s288_s18 = scalar_lea.vmem [#allocation7], %s1270_s12  ;;  %s1373_s8 = scalar_lea.hbm %s1543_s5, %s762_s15 }
  0x4f   : > { %s295_s2 = sshll.u32 %s288_s18, 4  ;;  %s1107_s3 = scalar_lea.hbm %s1373_s8, 2048  ;;  %s1375_s2 = int_to_ptr.vmem [resolvable:$true] %s295_s2 }
  0x50   : > { %p1108_p13 = scmp.ne.s32.totalorder %s1373_s8, %s1107_s3  ;;  %s1112_s12 = scalar_lea.hbm %s1543_s5, 4096 }
  0x51   : > { %p1113_p12 = scmp.lt.u32.totalorder %s1373_s8, %s1543_s5  ;;  %p1114_p0 = scmp.lt.u32.totalorder %s1112_s12, %s1107_s3 }
  0x52   : > { %p1110_p4 = pnand %p1108_p13, %p1295_p11  ;;  %p1116_p7 = scmp.lt.u32.totalorder %s1107_s3, %s1373_s8 }
  0x53   : > { %p1115_p1 = por %p1114_p0, %p1113_p12 }
  0x54   : > { %p1111_p10 = pneg %p1110_p4 }
  0x55   : > { %p1117_p9 = por %p1116_p7, %p1115_p1 }
  0x57   : > { %p1118_p2 = pnand %p1117_p9, %p1111_p10 }
  0x59   : > { %1121 = shalt.err (!%p1118_p2)
}
  0x5a   : > { %s1122_s17 = scalar_lea.vmem %s1375_s2, 2048  ;;  %s1182_s15 = smov [#allocation7]  }
  0x5b   : > { %p1123_p3 = scmp.ne.s32.totalorder %s1375_s2, %s1122_s17  ;;  %s1127_s18 = sshll.u32 %s1182_s15, 4  ;;  %s1128_s18 = int_to_ptr.vmem [resolvable:$false] %s1127_s18 }
  0x5c   : > { %s1129_s13 = scalar_lea.vmem %s1128_s18, 4096  ;;  %p1130_p13 = scmp.lt.s32.totalorder %s1375_s2, %s1128_s18 }
  0x5d   : > { %p1125_p5 = pnand %p1123_p3, %p1295_p11  ;;  %p1131_p4 = scmp.lt.s32.totalorder %s1129_s13, %s1122_s17 }
  0x5f   : > { %p1126_p6 = pneg %p1125_p5  ;;  %p1132_p12 = por %p1131_p4, %p1130_p13 }
  0x61   : > { %p1133_p0 = pnand %p1132_p12, %p1126_p6 }
  0x63   : > { %1136 = shalt.err (!%p1133_p0)
}
  0x64   : > { %1006 = dma.hbm_to_vmem [thread:$0]  (!%p1273_p8), %s1373_s8, 2048, %s1375_s2, %s1289_s21, %s1564_s16, %s1564_s16, %s1563_s22  }
  0x65   : > { %p1566_p11 = scmp.ne.s32.totalorder %s1561_s24, 0 }
  0x66   : > { %s309_s3 = sand.u32 (!%p1566_p11), 1, %s1167_s25   ;;  %p1567_p10 = scmp.ne.s32.totalorder (!%p1566_p11), %s1555_s10, 0 }
  0x67   : > { %307 = sbr.rel (%p1566_p11) target bundleno = 602 (0x25a), region = 48  ;;  %s755_s23 = sshll.u32 (!%p1566_p11), %s309_s3, 7 }
  0x68   : > { %s310_s30 = scalar_lea.sflag (!%p1566_p11), [#allocation4], %s309_s3  ;;  %s1405_s11 = scalar_lea.vmem (!%p1566_p11), [#allocation3], %s755_s23 }
  0x6e   : > { %1154 = dma.done.wait (%p1567_p10), %s310_s30, 2048  }
  0x6f   : > { %1156 = vsyncadd (%p1567_p10), %s310_s30, 4294965248  ;;  %s318_s14 = sand.u32 1, %s1246_s28   ;;  %s1412_s2 = scalar_lea.vmem [#allocation5], %s755_s23 }
  0x70   : > { %s319_s27 = scalar_lea.sflag [#allocation6], %s318_s14 }
  0x71   : > { %1158 = dma.done.wait (%p1567_p10), %s319_s27, 4096  }
  0x72   : > { %1160 = vsyncadd (%p1567_p10), %s319_s27, 4294963200  ;;  %p370_p8 = scmp.lt.s32.totalorder %s1246_s28, 1  ;;  %s1426_s8 = scalar_lea.vmem [#allocation7], %s755_s23 }
  0x73   : > { %p758_p1 = scmp.ne.s32.totalorder %s1246_s28, 0 }
  0x74   : > { %s1420_s21 = scalar_select %p370_p8, %s1246_s28, 1 }
  0x75   : > { %377 = sbr.rel (%p758_p1) target bundleno = 124 (0x7c), region = 64  ;;  %v1183_v0 = vmov (!%p758_p1), 0.0  }
  0x76   : > { %s372_s16 = scalar_lea.vmem %s1542_s4, %s1420_s21  ;;  %378 = vst [vmem:[#allocation2] sm:$0x1] (!%p758_p1), %v1183_v0 }
  0x7c PF: > { %v397_v1 = vld [vmem:[%s1412_s2] sm:$0xff]  ;;  %v398_v2 = vld [vmem:[%s1412_s2 + $0x8] sm:$0xff]  ;;  %v1184_v4 = vmov 0.0|0.0   ;;  %v399_v7 = vld [vmem:[%s1412_s2 + $0x10] sm:$0xff]  ;;  %vm1185_vm0 = vmmov 0   ;;  %v1186_v12 = vmov 0.0  }
  0x7d   : > { %v380_v3 = vld [vmem:[%s1405_s11] sm:$0xff]  ;;  %919 = vmatprep.subr.bf16.mxu0 %v1184_v4  ;;  %943 = vmatprep.subr.bf16.mxu1 %v1184_v4  ;;  %v920_v5 = vpack.c.bf16 %v398_v2, %v397_v1  ;;  %v381_v6 = vld [vmem:[%s1405_s11 + $0x8] sm:$0xff]  ;;  %v400_v8 = vld [vmem:[%s1412_s2 + $0x18] sm:$0xff]  ;;  %p759_p7 = scmp.ne.s32.totalorder %s1246_s28, 1 }
  0x7e   : > { %v944_v9 = vpack.c.bf16 %v381_v6, %v380_v3  ;;  %v382_v10 = vld [vmem:[%s1405_s11 + $0x10] sm:$0xff]  ;;  %v383_v11 = vld [vmem:[%s1405_s11 + $0x18] sm:$0xff]  ;;  %846 = vmatprep.mubr.msk.f32.mxu0 %vm1185_vm0, %v1186_v12  ;;  %881 = vmatprep.mubr.msk.f32.mxu1 %vm1185_vm0, %v1186_v12  ;;  %v923_v13 = vpack.c.bf16 %v400_v8, %v399_v7  ;;  %v401_v15 = vld [vmem:[%s1412_s2 + $0x20] sm:$0xff] }
  0x7f   : > { %921 = vmatpush3.bf16.msra.mxu0 %v920_v5  ;;  %v947_v14 = vpack.c.bf16 %v383_v11, %v382_v10  ;;  %v402_v16 = vld [vmem:[%s1412_s2 + $0x28] sm:$0xff]  ;;  %v384_v17 = vld [vmem:[%s1405_s11 + $0x20] sm:$0xff]  ;;  %v403_v21 = vld [vmem:[%s1412_s2 + $0x30] sm:$0xff] }
  0x80   : > { %945 = vmatpush3.bf16.msra.mxu1 %v944_v9  ;;  %922 = vmatprep.subr.bf16.mxu0 %v1184_v4  ;;  %v385_v18 = vld [vmem:[%s1405_s11 + $0x28] sm:$0xff]  ;;  %v926_v19 = vpack.c.bf16 %v402_v16, %v401_v15  ;;  %v404_v22 = vld [vmem:[%s1412_s2 + $0x38] sm:$0xff]  ;;  %v386_v23 = vld [vmem:[%s1405_s11 + $0x30] sm:$0xff] }
  0x81   : > { %946 = vmatprep.subr.bf16.mxu1 %v1184_v4  ;;  %v950_v20 = vpack.c.bf16 %v385_v18, %v384_v17  ;;  %v387_v24 = vld [vmem:[%s1405_s11 + $0x38] sm:$0xff]  ;;  %v929_v25 = vpack.c.bf16 %v404_v22, %v403_v21  ;;  %v405_v27 = vld [vmem:[%s1412_s2 + $0x40] sm:$0xff]  ;;  %v406_v28 = vld [vmem:[%s1412_s2 + $0x48] sm:$0xff] }
  0x82   : > { %v953_v26 = vpack.c.bf16 %v387_v24, %v386_v23  ;;  %v388_v29 = vld [vmem:[%s1405_s11 + $0x40] sm:$0xff]  ;;  %v389_v30 = vld [vmem:[%s1405_s11 + $0x48] sm:$0xff]  ;;  %v932_v31 = vpack.c.bf16 %v406_v28, %v405_v27  ;;  %v407_v33 = vld [vmem:[%s1412_s2 + $0x50] sm:$0xff] }
  0x83   : > { %924 = vmatpush3.bf16.msra.mxu0 %v923_v13  ;;  %v956_v32 = vpack.c.bf16 %v389_v30, %v388_v29  ;;  %v408_v34 = vld [vmem:[%s1412_s2 + $0x58] sm:$0xff]  ;;  %v390_v35 = vld [vmem:[%s1405_s11 + $0x50] sm:$0xff]  ;;  %v409_v39 = vld [vmem:[%s1412_s2 + $0x60] sm:$0xff] }
  0x84   : > { %948 = vmatpush3.bf16.msra.mxu1 %v947_v14  ;;  %925 = vmatprep.subr.bf16.mxu0 %v1184_v4  ;;  %v391_v36 = vld [vmem:[%s1405_s11 + $0x58] sm:$0xff]  ;;  %v935_v37 = vpack.c.bf16 %v408_v34, %v407_v33  ;;  %v410_v40 = vld [vmem:[%s1412_s2 + $0x68] sm:$0xff]  ;;  %v392_v41 = vld [vmem:[%s1405_s11 + $0x60] sm:$0xff] }
  0x85   : > { %949 = vmatprep.subr.bf16.mxu1 %v1184_v4  ;;  %v959_v38 = vpack.c.bf16 %v391_v36, %v390_v35  ;;  %v393_v42 = vld [vmem:[%s1405_s11 + $0x68] sm:$0xff]  ;;  %v938_v43 = vpack.c.bf16 %v410_v40, %v409_v39  ;;  %v411_v45 = vld [vmem:[%s1412_s2 + $0x70] sm:$0xff]  ;;  %v412_v46 = vld [vmem:[%s1412_s2 + $0x78] sm:$0xff] }
  0x86   : > { %v962_v44 = vpack.c.bf16 %v393_v42, %v392_v41  ;;  %v394_v47 = vld [vmem:[%s1405_s11 + $0x70] sm:$0xff]  ;;  %v395_v48 = vld [vmem:[%s1405_s11 + $0x78] sm:$0xff]  ;;  %v941_v49 = vpack.c.bf16 %v412_v46, %v411_v45  ;;  %v556_v51 = vld [vmem:[%s1426_s8] sm:$0xff] }
  0x87   : > { %927 = vmatpush3.bf16.msra.mxu0 %v926_v19  ;;  %v965_v50 = vpack.c.bf16 %v395_v48, %v394_v47  ;;  %v557_v52 = vld [vmem:[%s1426_s8 + $0x8] sm:$0xff]  ;;  %v396_v53 = vld [vmem:[%s1539_s1] sm:$0x1]  ;;  %v558_v56 = vld [vmem:[%s1426_s8 + $0x10] sm:$0xff] }
  0x88   : > { %951 = vmatpush3.bf16.msra.mxu1 %v950_v20  ;;  %928 = vmatprep.subr.bf16.mxu0 %v1184_v4  ;;  %v968_v54 = vpack.c.bf16 %v557_v52, %v556_v51  ;;  %v379_v55 = vld [vmem:[%s1538_s0] sm:$0x1]  ;;  %v560_v59 = vld [vmem:[%s1426_s8 + $0x20] sm:$0xff]  ;;  %v561_v60 = vld [vmem:[%s1426_s8 + $0x28] sm:$0xff] }
  0x89   : > { %952 = vmatprep.subr.bf16.mxu1 %v1184_v4  ;;  %v559_v57 = vld [vmem:[%s1426_s8 + $0x18] sm:$0xff]  ;;  %v974_v61 = vpack.c.bf16 %v561_v60, %v560_v59  ;;  %v562_v62 = vld [vmem:[%s1426_s8 + $0x30] sm:$0xff]  ;;  %v564_v1 = vld [vmem:[%s1426_s8 + $0x40] sm:$0xff] }
  0x8a   : > { %v971_v58 = vpack.c.bf16 %v559_v57, %v558_v56  ;;  %v563_v63 = vld [vmem:[%s1426_s8 + $0x38] sm:$0xff]  ;;  %v565_v2 = vld [vmem:[%s1426_s8 + $0x48] sm:$0xff]  ;;  %v566_v5 = vld [vmem:[%s1426_s8 + $0x50] sm:$0xff] }
  0x8b   : > { %930 = vmatpush3.bf16.msra.mxu0 %v929_v25  ;;  %v977_v0 = vpack.c.bf16 %v563_v63, %v562_v62  ;;  %v980_v3 = vpack.c.bf16 %v565_v2, %v564_v1  ;;  %v567_v6 = vld [vmem:[%s1426_s8 + $0x58] sm:$0xff]  ;;  %v568_v8 = vld [vmem:[%s1426_s8 + $0x60] sm:$0xff]  ;;  %v569_v9 = vld [vmem:[%s1426_s8 + $0x68] sm:$0xff] }
  0x8c   : > { %954 = vmatpush3.bf16.msra.mxu1 %v953_v26  ;;  %931 = vmatprep.subr.bf16.mxu0 %v1184_v4  ;;  %v983_v7 = vpack.c.bf16 %v567_v6, %v566_v5  ;;  %v986_v10 = vpack.c.bf16 %v569_v9, %v568_v8  ;;  %v570_v11 = vld [vmem:[%s1426_s8 + $0x70] sm:$0xff]  ;;  %v553_v16 = vld [vmem:[%s372_s16] sm:$0x1] }
  0x8d   : > { %955 = vmatprep.subr.bf16.mxu1 %v1184_v4  ;;  %v572_v22 = vld [vmem:[#allocation2] sm:$0x1] }
  0x8e   : > { %v650_v26 = vld [vmem:[%s1544_s6] sm:$0x1] (!%p759_p7) }
  0x8f   : > { %933 = vmatpush3.bf16.msra.mxu0 %v932_v31 }
  0x90   : > { %957 = vmatpush3.bf16.msra.mxu1 %v956_v32  ;;  %934 = vmatprep.subr.bf16.mxu0 %v1184_v4 }
  0x91   : > { %958 = vmatprep.subr.bf16.mxu1 %v1184_v4 }
  0x93   : > { %936 = vmatpush3.bf16.msra.mxu0 %v935_v37 }
  0x94   : > { %960 = vmatpush3.bf16.msra.mxu1 %v959_v38  ;;  %937 = vmatprep.subr.bf16.mxu0 %v1184_v4 }
  0x95   : > { %961 = vmatprep.subr.bf16.mxu1 %v1184_v4 }
  0x97   : > { %939 = vmatpush3.bf16.msra.mxu0 %v938_v43 }
  0x98   : > { %963 = vmatpush3.bf16.msra.mxu1 %v962_v44  ;;  %940 = vmatprep.subr.bf16.mxu0 %v1184_v4 }
  0x99   : > { %964 = vmatprep.subr.bf16.mxu1 %v1184_v4 }
  0x9b   : > { %942 = vmatpush3.bf16.msra.mxu0 %v941_v49 }
  0x9c   : > { %966 = vmatpush3.bf16.msra.mxu1 %v965_v50  ;;  %967 = vmatprep.subr.bf16.mxu0 %v1184_v4 }
  0x9e   : > { %847 = vmatmul.mubr.f32.vlgmr.msra.gmra.mrb[0].mxu0 %v396_v53 }
  0x9f   : > { %882 = vmatmul.mubr.f32.vlgmr.msra.gmra.mrb[0].mxu1 %v379_v55  ;;  %969 = vmatpush3.bf16.msra.mxu0 %v968_v54 }
  0xa0   : > { %970 = vmatprep.subr.bf16.mxu0 %v1184_v4  ;;  %916 = vmatprep.mubr.msk.f32.mxu0 %vm1185_vm0, %v1186_v12  ;;  %v571_v12 = vld [vmem:[%s1426_s8 + $0x78] sm:$0xff] }
  0xa1   : > { %v989_v13 = vpack.c.bf16 %v571_v12, %v570_v11 }
  0xa3   : > { %972 = vmatpush3.bf16.msra.mxu0 %v971_v58 }
  0xa4   : > { %973 = vmatprep.subr.bf16.mxu0 %v1184_v4 }
  0xa7   : > { %975 = vmatpush3.bf16.msra.mxu0 %v974_v61 }
  0xa8   : > { %976 = vmatprep.subr.bf16.mxu0 %v1184_v4 }
  0xab   : > { %978 = vmatpush3.bf16.msra.mxu0 %v977_v0 }
  0xac   : > { %979 = vmatprep.subr.bf16.mxu0 %v1184_v4 }
  0xaf   : > { %981 = vmatpush3.bf16.msra.mxu0 %v980_v3 }
  0xb0   : > { %982 = vmatprep.subr.bf16.mxu0 %v1184_v4 }
  0xb3   : > { %984 = vmatpush3.bf16.msra.mxu0 %v983_v7 }
  0xb4   : > { %985 = vmatprep.subr.bf16.mxu0 %v1184_v4 }
  0xb7   : > { %987 = vmatpush3.bf16.msra.mxu0 %v986_v10 }
  0xb8   : > { %988 = vmatprep.subr.bf16.mxu0 %v1184_v4 }
  0xbb   : > { %990 = vmatpush3.bf16.msra.mxu0 %v989_v13 }
 0x171   : > { %v479_v14 = vpop.f32.mrb[0].mxu0 }
 0x172   : > { %v549_v15 = vpop.f32.mrb[0].mxu1  ;;  %v848_v17 = vpop.f32.mrb[1].mxu0 }
 0x173   : > { %v550_v18 = vadd.f32 %v549_v15, %v479_v14  ;;  %v883_v19 = vpop.f32.mrb[1].mxu1 }
 0x175   : > { %v554_v20 = vadd.f32 %v553_v16, %v550_v18 }
 0x177   : > { %v555_v21 = vmax.f32 %v554_v20, 0.0 }
 0x179   : > { %917 = vmatmul.mubr.f32.vlgmr.msra.gmra.mrb[2].mxu0 %v555_v21 }
 0x249   : > { %648 = sbr.rel (%p759_p7) target bundleno = 602 (0x25a), region = 68 }
 0x24c   : > { %v639_v23 = vpop.f32.mrb[2].mxu0 }
 0x24d   : > { %v643_v4 = vadd.f32 %v639_v23, %v572_v22  ;;  %v918_v24 = vpop.f32.mrb[3].mxu0 }
 0x24f   : > { %644 = vst [vmem:[#allocation2] sm:$0x1] %v643_v4 }
 0x256   : > { %v649_v25 = vld [vmem:[#allocation2] sm:$0x1] }
 0x257   : > { %v651_v27 = vadd.f32 %v650_v26, %v649_v25 }
 0x259   : > { %652 = vst [vmem:[%s1545_s7] sm:$0x1] %v651_v27 }
 0x25a PF: > { %p20_p9 = scmp.ge.s32.totalorder %s1249_s29, 4   ;;  %s1568_s24 = smov %s1167_s25 }
 0x25b   : > { %s1569_s25 = smov %s1171_s26  ;;  %s1570_s26 = smov %s1259_s9 }
 0x25c   : > { %s1571_s27 = smov %s1249_s29  ;;  %22 = sbr.rel (!%p20_p9) target bundleno = 8 (0x8), region = 119 }
 0x263   :  { %664 = vsyncpa [#allocation4], 1 }
 0x264   :  { %666 = vsyncpa [#allocation4 + $0x1], 1 }
 0x265   :  { %667 = vsyncpa [#allocation6], 1 }
 0x266   :  { %669 = vsyncpa [#allocation6 + $0x1], 1 }

</bundles_post_ra>
